<compile_context>
chip_gen: v7x
topology: tpu7x:2x2x1
jax: 0.10.0
libtpu: 0.0.40
codegen_flags: <defaults>
</compile_context>

<pallas_src>
import math

import jax
import jax.numpy as jnp
from jax import lax
from jax.experimental import pallas as pl
from jax.experimental.pallas import tpu as pltpu


def _wlpe_kernel_pack1(h_ref, wl_ref, div_ref, phase_ref, o_ref):
    """out = h + sin(wl * div + phase); one node row per lane-row."""
    h = h_ref[...].astype(jnp.float32)        # (TM, lanes)
    wl = wl_ref[...]                          # (TM, 1) f32
    arg = wl * div_ref[...] + phase_ref[...]  # broadcast over lanes
    o_ref[...] = (h + jnp.sin(arg)).astype(o_ref.dtype)


def _wlpe_kernel_packed(h_ref, wl_ref, expand_ref, div_ref, phase_ref, o_ref):
    """out = h + sin(wl_wide * div + phase); `pack` node rows per lane-row."""
    h = h_ref[...].astype(jnp.float32)        # (TM, lanes)
    wl = wl_ref[...]                          # (TM, pack) f32
    # Expand wl across the packed lane groups on the MXU (idle in this kernel).
    # precision=HIGHEST keeps wl at full f32 (the expansion matrix is 0/1, so
    # the multi-pass f32 matmul reconstructs wl exactly) before it enters sin.
    wl_wide = lax.dot_general(
        wl, expand_ref[...],
        dimension_numbers=(((1,), (0,)), ((), ())),
        precision=lax.Precision.HIGHEST,
        preferred_element_type=jnp.float32)   # (TM, lanes)
    arg = wl_wide * div_ref[...] + phase_ref[...]
    o_ref[...] = (h + jnp.sin(arg)).astype(o_ref.dtype)


def wl_positional_encoding(h, precomputed_eigenvectors, *, tile_rows=None):
    """h: (num_nodes, nhid) float; precomputed_eigenvectors: (num_nodes,) float."""
    n, nhid = h.shape
    wl = precomputed_eigenvectors.reshape(n).astype(jnp.float32)

    # Column-only tables, hoisted out of the kernel.
    #   div[j]   = exp((j - j%2) * (-ln(10000)/nhid))   (same for cols 2i, 2i+1)
    #   phase[j] = 0 for even j (sin), pi/2 for odd j (sin(x+pi/2) == cos(x))
    # Note: odd nhid is handled by this (col - parity) formulation; the original
    # torch code would shape-mismatch there, so even nhid (model default 80) is
    # the supported/intended case.
    col = jnp.arange(nhid, dtype=jnp.float32)
    parity = jnp.mod(col, 2.0)
    div_row = jnp.exp((col - parity) * jnp.float32(-math.log(10000.0) / nhid))
    phase_row = parity * jnp.float32(math.pi / 2.0)

    # Lane-dense LCM packing: pack = 128/gcd(nhid,128) node rows per lane-row so
    # the last dim becomes a multiple of 128 (nhid=80 -> pack=8, lanes=640).
    g = math.gcd(nhid, 128)
    pack = 128 // g
    lanes = nhid * pack
    if pack > 16 or lanes > 2048:   # pathological nhid (e.g. odd): fall back
        pack, lanes = 1, nhid

    # Pad node count up to a multiple of pack; padded rows are sliced off below.
    n_pad = pl.cdiv(n, pack) * pack
    if n_pad != n:
        h_p = jnp.pad(h, ((0, n_pad - n), (0, 0)))
        wl_p = jnp.pad(wl, (0, n_pad - n))
    else:
        h_p, wl_p = h, wl
    rows = n_pad // pack

    h_in = h_p.reshape(rows, lanes)                       # contiguous reshape
    wl_in = wl_p.reshape(rows, pack)
    div_in = jnp.tile(div_row, pack).reshape(1, lanes)
    phase_in = jnp.tile(phase_row, pack).reshape(1, lanes)

    # Row-tile size from a per-step byte target (~3 MiB per h/out block).
    # Rough VMEM accounting: h + out double-buffered (4 blocks) plus ~4 f32
    # temporaries -> ~8 block-equivalents, kept under a 24 MiB block budget so
    # the explicit 32 MiB vmem_limit (safe on v5e/v6e/v7x) has headroom.
    block_budget = 24 * 1024 * 1024
    vmem_limit = 32 * 1024 * 1024
    tm_cap = max(8, (block_budget // (lanes * 4 * 8)) // 8 * 8)
    tm = tm_cap if tile_rows is None else min(tile_rows, tm_cap)
    # v7x megacore: keep >= ~8 grid steps for large inputs so both TCs stay busy.
    min_steps = 8
    if rows > min_steps * 8:
        tm = min(tm, max(8, ((pl.cdiv(rows, min_steps) + 7) // 8) * 8))
    if tm >= rows:
        tm = rows                     # single block: full-extent dim is legal
    else:
        tm = max(8, (tm // 8) * 8)    # 2nd-minor block dim multiple of 8
    grid = (pl.cdiv(rows, tm),)

    itemsize = jnp.dtype(h.dtype).itemsize
    cost = pl.CostEstimate(
        flops=(3 + 2 * pack) * n_pad * nhid,   # mul/adds + MXU expansion
        transcendentals=n_pad * nhid,          # one sin per element
        bytes_accessed=2 * n_pad * nhid * itemsize
        + 4 * (n_pad + (2 + pack) * lanes),
    )

    common_in_specs = [
        pl.BlockSpec((tm, lanes), lambda i: (i, 0)),   # h tile
        pl.BlockSpec((tm, pack), lambda i: (i, 0)),    # wl tile
    ]
    resident_specs = [
        pl.BlockSpec((1, lanes), lambda i: (0, 0)),    # div (resident)
        pl.BlockSpec((1, lanes), lambda i: (0, 0)),    # phase (resident)
    ]

    if pack == 1:
        kernel = _wlpe_kernel_pack1
        in_specs = common_in_specs + resident_specs
        inputs = (h_in, wl_in, div_in, phase_in)
    else:
        # 0/1 expansion matrix: lane c belongs to packed node row c // nhid.
        lane_idx = jnp.arange(lanes, dtype=jnp.int32)
        expand_mat = (lane_idx[None, :] // nhid
                      == jnp.arange(pack, dtype=jnp.int32)[:, None]
                      ).astype(jnp.float32)              # (pack, lanes)
        kernel = _wlpe_kernel_packed
        in_specs = (common_in_specs
                    + [pl.BlockSpec((pack, lanes), lambda i: (0, 0))]  # resident
                    + resident_specs)
        inputs = (h_in, wl_in, expand_mat, div_in, phase_in)

    out = pl.pallas_call(
        kernel,
        out_shape=jax.ShapeDtypeStruct((rows, lanes), h.dtype),
        grid_spec=pl.GridSpec(
            grid=grid,
            in_specs=in_specs,
            out_specs=pl.BlockSpec((tm, lanes), lambda i: (i, 0)),
        ),
        compiler_params=pltpu.CompilerParams(
            dimension_semantics=("parallel",),
            vmem_limit_bytes=vmem_limit,
        ),
        cost_estimate=cost,
    )(*inputs)

    return out.reshape(n_pad, nhid)[:n]


def _reference(h, wl):
    num_nodes, nhid = h.shape
    div_term = jnp.exp(
        jnp.arange(0, nhid, 2, dtype=jnp.float32) * (-math.log(10000.0) / nhid)
    )
    arg = wl[:, None] * div_term[None, :]            # (N, nhid//2)
    enc = jnp.zeros((num_nodes, nhid), jnp.float32)
    enc = enc.at[:, 0::2].set(jnp.sin(arg))
    enc = enc.at[:, 1::2].set(jnp.cos(arg))
    return h + enc


if __name__ == "__main__":
    key = jax.random.PRNGKey(0)

    # Small shape cases covering all layout paths.
    cases = [
        (64, 32),    # packed path, pack=4 (128 lanes), no padding
        (26, 80),    # model-default nhid=80: pack=8 (640 lanes), padded 26 -> 32
        (40, 128),   # already lane-dense (nhid multiple of 128), pack=1
    ]
    for idx, (n, nhid) in enumerate(cases):
        k1, k2 = jax.random.split(jax.random.fold_in(key, idx))
        h = jax.random.normal(k1, (n, nhid), dtype=jnp.float32)
        wl_code = jax.random.normal(k2, (n,), dtype=jnp.float32)
        out = jax.block_until_ready(wl_positional_encoding(h, wl_code))
        ref = _reference(h, wl_code)
        assert out.shape == (n, nhid)
        assert jnp.allclose(out, ref, atol=2e-5, rtol=2e-5), (n, nhid)

    # Exercise a multi-step pipelined grid (partial last block) at small scale.
    k1, k2 = jax.random.split(jax.random.fold_in(key, 100))
    n, nhid = 200, 32            # pack=4 -> rows=50, tm=16 -> 4 steps (last partial)
    h = jax.random.normal(k1, (n, nhid), dtype=jnp.float32)
    wl_code = jax.random.normal(k2, (n,), dtype=jnp.float32)
    out = jax.block_until_ready(wl_positional_encoding(h, wl_code, tile_rows=16))
    ref = _reference(h, wl_code)
    assert jnp.allclose(out, ref, atol=2e-5, rtol=2e-5)

    print("KERNEL_OK")
</pallas_src>

<mosaic_0001>
module attributes {stable_mosaic.version = 11 : i64} {
  func.func @_wlpe_kernel_packed(%arg0: i32, %arg1: memref<16x128xf32, #tpu.memory_space<vmem>>, %arg2: memref<16x4xf32, #tpu.memory_space<vmem>>, %arg3: memref<4x128xf32, #tpu.memory_space<vmem>>, %arg4: memref<1x128xf32, #tpu.memory_space<vmem>>, %arg5: memref<1x128xf32, #tpu.memory_space<vmem>>, %arg6: memref<16x128xf32, #tpu.memory_space<vmem>>) attributes {dimension_semantics = [#tpu.dimension_semantics<parallel>], iteration_bounds = array<i64: 1>, scalar_prefetch = 0 : i64, scratch_operands = 0 : i64, tpu.core_type = #tpu.core_type<tc>, window_params = [{transform_indices = @transform_0, window_bounds = array<i64: 16, 128>}, {transform_indices = @transform_1, window_bounds = array<i64: 16, 4>}, {pipeline_mode = #tpu.pipeline_mode<synchronous>, transform_indices = @transform_2, window_bounds = array<i64: 4, 128>}, {pipeline_mode = #tpu.pipeline_mode<synchronous>, transform_indices = @transform_3, window_bounds = array<i64: 1, 128>}, {pipeline_mode = #tpu.pipeline_mode<synchronous>, transform_indices = @transform_4, window_bounds = array<i64: 1, 128>}, {transform_indices = @transform_5, window_bounds = array<i64: 16, 128>}]} {
    %c0 = arith.constant 0 : index
    %c0_0 = arith.constant 0 : index
    %0 = vector.load %arg1[%c0, %c0_0] : memref<16x128xf32, #tpu.memory_space<vmem>>, vector<16x128xf32>
    %c0_1 = arith.constant 0 : index
    %c0_2 = arith.constant 0 : index
    %1 = vector.load %arg2[%c0_1, %c0_2] : memref<16x4xf32, #tpu.memory_space<vmem>>, vector<16x4xf32>
    %c0_3 = arith.constant 0 : index
    %c0_4 = arith.constant 0 : index
    %2 = vector.load %arg3[%c0_3, %c0_4] : memref<4x128xf32, #tpu.memory_space<vmem>>, vector<4x128xf32>
    %cst = arith.constant dense<0.000000e+00> : vector<16x128xf32>
    %3 = tpu.matmul %1, %2, %cst {dimension_numbers = #tpu.dot_dimension_numbers<[1], [0], [0], [1], [0, 0, 1, 1], [], []>, precision = #tpu.contract_precision<fp32>} : vector<16x4xf32>, vector<4x128xf32>, vector<16x128xf32> -> vector<16x128xf32>
    %c0_5 = arith.constant 0 : index
    %c0_6 = arith.constant 0 : index
    %4 = vector.load %arg4[%c0_5, %c0_6] : memref<1x128xf32, #tpu.memory_space<vmem>>, vector<1x128xf32>
    %5 = vector.broadcast %4 : vector<1x128xf32> to vector<16x128xf32>
    %6 = arith.mulf %3, %5 : vector<16x128xf32>
    %c0_7 = arith.constant 0 : index
    %c0_8 = arith.constant 0 : index
    %7 = vector.load %arg5[%c0_7, %c0_8] : memref<1x128xf32, #tpu.memory_space<vmem>>, vector<1x128xf32>
    %8 = vector.broadcast %7 : vector<1x128xf32> to vector<16x128xf32>
    %9 = arith.addf %6, %8 : vector<16x128xf32>
    %10 = math.sin %9 : vector<16x128xf32>
    %11 = arith.addf %0, %10 : vector<16x128xf32>
    %c0_9 = arith.constant 0 : index
    %c0_10 = arith.constant 0 : index
    %12 = vector.load %arg6[%c0_9, %c0_10] : memref<16x128xf32, #tpu.memory_space<vmem>>, vector<16x128xf32>
    tpu.vector_store %arg6[%c0_9, %c0_10], %11 {strides = array<i32>} : memref<16x128xf32, #tpu.memory_space<vmem>>, vector<16x128xf32>,
    return
  }
  func.func @transform_0(%arg0: i32) -> (i32, i32) {
    %c0_i32 = arith.constant 0 : i32
    %c0_i32_0 = arith.constant 0 : i32
    return %arg0, %c0_i32 : i32, i32
  }
  func.func @transform_1(%arg0: i32) -> (i32, i32) {
    %c0_i32 = arith.constant 0 : i32
    %c0_i32_0 = arith.constant 0 : i32
    return %arg0, %c0_i32 : i32, i32
  }
  func.func @transform_2(%arg0: i32) -> (i32, i32) {
    %c0_i32 = arith.constant 0 : i32
    %c0_i32_0 = arith.constant 0 : i32
    %c0_i32_1 = arith.constant 0 : i32
    return %c0_i32, %c0_i32_0 : i32, i32
  }
  func.func @transform_3(%arg0: i32) -> (i32, i32) {
    %c0_i32 = arith.constant 0 : i32
    %c0_i32_0 = arith.constant 0 : i32
    %c0_i32_1 = arith.constant 0 : i32
    return %c0_i32, %c0_i32_0 : i32, i32
  }
  func.func @transform_4(%arg0: i32) -> (i32, i32) {
    %c0_i32 = arith.constant 0 : i32
    %c0_i32_0 = arith.constant 0 : i32
    %c0_i32_1 = arith.constant 0 : i32
    return %c0_i32, %c0_i32_0 : i32, i32
  }
  func.func @transform_5(%arg0: i32) -> (i32, i32) {
    %c0_i32 = arith.constant 0 : i32
    %c0_i32_0 = arith.constant 0 : i32
    return %arg0, %c0_i32 : i32, i32
  }
}

</mosaic_0001>

<bundles_post_ra>
// kernel: tpu_custom_call.1
= control target key start
LH: loop header
LB: loop body
LE: loop exit
PB: predicated region body
PF: predicated region fallthrough
CT: control target
= control target key end

     0   :  { %vm33_vm0 = vcmask 1043456   ;;  %vm26_vm1 = vcmask 31744   ;;  %s1023_s0 = inlined_call_operand.vmem [shape: f32[16,128], index: 0, kind: input, shape index: {}]   ;;  %s1024_s1 = inlined_call_operand.vmem [shape: f32[16,4], index: 1, kind: input, shape index: {}]   ;;  %s1025_s2 = inlined_call_operand.vmem [shape: f32[4,128], index: 2, kind: input, shape index: {}]   ;;  %s1026_s3 = inlined_call_operand.vmem [shape: f32[1,128], index: 3, kind: input, shape index: {}]   ;;  %s1027_s4 = inlined_call_operand.vmem [shape: f32[1,128], index: 4, kind: input, shape index: {}]   ;;  %s1028_s5 = inlined_call_operand.hbm [shape: f32[16,128], index: 5, kind: output, shape index: {}]  }
   0x1   :  { %v25_v0 = vld [vmem:[%s1025_s2] sm:$0xf]  ;;  %v24_v2 = vld [vmem:[%s1024_s1 + $0x8] sm:$0xff] }
   0x2   :  { %v23_v1 = vld [vmem:[%s1024_s1] sm:$0xff]  ;;  %v35_v3 = vsel %vm33_vm0, %v25_v0, 0  ;;  %v31_v5 = vsel %vm26_vm1, %v24_v2, 0 }
   0x3   :  { %v28_v4 = vsel %vm26_vm1, %v23_v1, 0 }
   0x4   :  { %10 = vsyncpa [#allocation3], 0  ;;  %v38_v6 = vand.u32 4294901760, %v35_v3  ;;  %v103_v7 = vand.u32 4294901760, %v28_v4  ;;  %v113_v8 = vand.u32 4294901760, %v31_v5  ;;  %s895_s28 = smov [#allocation2]  }
   0x5   :  { %v772_v24 = vld [vmem:[%s1026_s3] ss:$0 sm:$0xff]  ;;  %v889_v53 = vmov 683565275   ;;  %v890_v57 = vmov 2475754826  }
   0x6   :  { %815 = vmatprep.subr.mxu0 %v38_v6  ;;  %v104_v9 = vsub.f32 %v28_v4, %v103_v7  ;;  %v114_v10 = vsub.f32 %v31_v5, %v113_v8  ;;  %800 = vmatprep.subr.mxu1 %v38_v6  ;;  %v125_v11 = vsub.f32 %v35_v3, %v38_v6  ;;  %v773_v27 = vld [vmem:[%s1027_s4] ss:$0 sm:$0xff]  ;;  %v891_v59 = vmov 2131351028   ;;  %s761_s29 = sshll.u32 %s895_s28, 4  ;;  %s762_s29 = int_to_ptr.vmem [resolvable:$true] %s761_s29 }
   0x7   :  { %816 = vmatpush3.msra.mxu0 %v38_v6  ;;  %801 = vmatpush3.msra.mxu1 %v38_v6  ;;  %v892_v61 = vmov 2102212464   ;;  %v893_v63 = vmov 920167782   ;;  %s865_s30 = scalar_lea.vmem %s762_s29, 256  ;;  %p870_p1 = scmp.lt.s32.totalorder %s762_s29, %s762_s29 }
   0x8   :  { %v105_v12 = vand.u32 4294901760, %v104_v9  ;;  %v115_v13 = vand.u32 4294901760, %v114_v10  ;;  %v126_v14 = vand.u32 4294901760, %v125_v11  ;;  %p866_p0 = scmp.ne.s32.totalorder %s762_s29, %s865_s30  ;;  %p871_p2 = scmp.lt.s32.totalorder %s865_s30, %s865_s30 }
   0xa   :  { %817 = vmatprep.mubr.f32.mxu0 %v105_v12  ;;  %v106_v15 = vsub.f32 %v104_v9, %v105_v12  ;;  %v127_v16 = vsub.f32 %v125_v11, %v126_v14  ;;  %820 = vmatprep.subr.mxu0 %v126_v14  ;;  %v116_v17 = vsub.f32 %v114_v10, %v115_v13  ;;  %p872_p3 = por %p871_p2, %p870_p1 }
   0xb   :  { %818 = vmatmul.mubr.f32.vlgmr.msra.gmra.mrb[0].mxu0 %v115_v13 }
   0xc   :  { %v107_v18 = vand.u32 4294901760, %v106_v15  ;;  %v128_v19 = vand.u32 4294901760, %v127_v16  ;;  %v117_v20 = vand.u32 4294901760, %v116_v17  ;;  %821 = vmatpush3.msra.mxu0 %v126_v14  ;;  %822 = vmatprep.mubr.f32.mxu0 %v103_v7  ;;  %p873_p4 = pnand %p872_p3, %p866_p0 }
   0xd   :  { %825 = vmatprep.subr.mxu0 %v38_v6 }
   0xe   :  { %802 = vmatprep.mubr.f32.mxu1 %v107_v18  ;;  %805 = vmatprep.subr.mxu1 %v128_v19 }
   0xf   :  { %803 = vmatmul.mubr.f32.vlgmr.msra.gmra.mrb[0].mxu1 %v117_v20 }
  0x10   :  { %806 = vmatpush3.msra.mxu1 %v128_v19  ;;  %807 = vmatprep.mubr.f32.mxu1 %v103_v7 }
  0x11   :  { %810 = vmatprep.subr.mxu1 %v125_v11 }
  0x13   :  { %823 = vmatmul.mubr.f32.vlgmr.msra.gmra.mrb[0].mxu0 %v113_v8 }
  0x14   :  { %826 = vmatpush3.msra.mxu0 %v38_v6  ;;  %827 = vmatprep.mubr.f32.mxu0 %v103_v7  ;;  %v894_v6 = vmov 1326507024  }
  0x17   :  { %808 = vmatmul.mubr.f32.vlgmr.msra.gmra.mrb[0].mxu1 %v113_v8 }
  0x18   :  { %811 = vmatpush3.msra.mxu1 %v125_v11  ;;  %812 = vmatprep.mubr.f32.mxu1 %v104_v9 }
  0x1b   :  { %828 = vmatmul.mubr.f32.vlgmr.msra.gmra.mrb[0].mxu0 %v113_v8 }
  0x1f   :  { %813 = vmatmul.mubr.f32.vlgmr.msra.gmra.mrb[0].mxu1 %v114_v10 }
  0xee   :  { %v829_v21 = vpop.f32.mrb[0].mxu0 }
  0xef   :  { %v516_v22 = vpop.f32.mrb[1].mxu0 }
  0xf2   :  { %v814_v23 = vpop.f32.mrb[0].mxu1 }
  0xf3   :  { %v830_v25 = vadd.f32 %v829_v21, %v814_v23  ;;  %v275_v26 = vpop.f32.mrb[1].mxu1 }
  0xf4   :  { %v831_v28 = vadd.f32 %v516_v22, %v275_v26 }
  0xf5   :  { %v534_v29 = vmul.f32 %v830_v25, %v772_v24 }
  0xf6   :  { %v533_v30 = vmul.f32 %v831_v28, %v772_v24 }
  0xf7   :  { %v943_v31 = vadd.f32 %v773_v27, %v534_v29 }
  0xf8   :  { %v945_v32 = vadd.f32 %v773_v27, %v533_v30 }
  0xf9   :  { %v648_v33 = vand.u32 2147483647, %v943_v31  ;;  %v651_v34 = vand.u32 2139095040, %v943_v31  ;;  %vm650_vm0 = vcmp.lt.s32.totalorder %v943_v31, 0 }
  0xfa   :  { %v547_v35 = vand.u32 2139095040, %v945_v32  ;;  %v544_v38 = vand.u32 2147483647, %v945_v32 }
  0xfb   :  { %v652_v36 = vshrl.u32 %v651_v34, 23  ;;  %v655_v37 = vand.u32 8388607, %v648_v33  ;;  %vm649_vm1 = vcmp.le.f32.partialorder %v648_v33, 0.7853982 }
  0xfc   :  { %v548_v39 = vshrl.u32 %v547_v35, 23  ;;  %v955_v44 = vand.u32 8388607, %v544_v38 }
  0xfd   :  { %v778_v40 = vadd.s32 4294967169, %v652_v36  ;;  %v656_v43 = vor.u32 8388608, %v655_v37 }
  0xfe   :  { %v774_v41 = vadd.s32 4294967169, %v548_v39  ;;  %v552_v51 = vor.u32 8388608, %v955_v44 }
  0xff   :  { %v658_v42 = vadd.s32 1, %v778_v40  ;;  %v957_v50 = vshll.u32 %v656_v43, 8 }
 0x100   :  { %v554_v45 = vadd.s32 1, %v774_v41 }
 0x101   :  { %vm659_vm2 = vcmp.gt.s32.totalorder %v658_v42, 0 }
 0x102   :  { %v660_v46 = vsel %vm659_vm2, %v658_v42, 0  ;;  %vm555_vm3 = vcmp.gt.s32.totalorder %v554_v45, 0  ;;  %vm546_vm2 = vcmp.lt.s32.totalorder %v945_v32, 0 }
 0x103   :  { %v661_v47 = vshrl.u32 %v660_v46, 5  ;;  %v662_v48 = vand.u32 31, %v660_v46  ;;  %v556_v49 = vsel %vm555_vm3, %v554_v45, 0  ;;  %v592_v45 = vshll.u32 %v552_v51, 8 }
 0x104   :  { %v960_v55 = vshrl.u32 %v556_v49, 5  ;;  %v558_v56 = vand.u32 31, %v556_v49  ;;  %vm545_vm3 = vcmp.le.f32.partialorder %v544_v38, 0.7853982  ;;  %v22_v38 = vld [vmem:[%s1023_s0 + $0x8] sm:$0xff] }
 0x105   :  { %v663_v52 = vsub.s32 32, %v662_v48  ;;  %v665_v54 = vshll.u32 %v889_v53, %v662_v48  ;;  %v668_v58 = vshll.u32 %v890_v57, %v662_v48  ;;  %v671_v60 = vshll.u32 %v891_v59, %v662_v48 }
 0x106   :  { %v674_v62 = vshll.u32 %v892_v61, %v662_v48  ;;  %v677_v0 = vshll.u32 %v893_v63, %v662_v48  ;;  %vm680_vm4 = vcmp.lt.s32.totalorder %v661_v47, 1  ;;  %vm681_vm5 = vcmp.lt.s32.totalorder %v661_v47, 2 }
 0x107   :  { %v666_v1 = vshrl.u32 %v890_v57, %v663_v52  ;;  %v669_v2 = vshrl.u32 %v891_v59, %v663_v52  ;;  %v672_v3 = vshrl.u32 %v892_v61, %v663_v52  ;;  %v664_v4 = vshrl.u32 %v889_v53, %v663_v52 }
 0x108   :  { %v675_v5 = vshrl.u32 %v893_v63, %v663_v52  ;;  %v678_v7 = vshrl.u32 %v894_v6, %v663_v52  ;;  %v559_v11 = vsub.s32 32, %v558_v56  ;;  %vm682_vm6 = vcmp.lt.s32.totalorder %v661_v47, 3 }
 0x109   :  { %v667_v8 = vor.u32 %v666_v1, %v665_v54  ;;  %v670_v9 = vor.u32 %v669_v2, %v668_v58  ;;  %v673_v10 = vor.u32 %v672_v3, %v671_v60  ;;  %vm683_vm7 = vcmp.lt.s32.totalorder %v661_v47, 4 }
 0x10a   :  { %v676_v12 = vor.u32 %v675_v5, %v674_v62  ;;  %v679_v13 = vor.u32 %v678_v7, %v677_v0  ;;  %v561_v21 = vshll.u32 %v889_v53, %v558_v56  ;;  %v562_v24 = vshrl.u32 %v890_v57, %v559_v11 }
 0x10b   :  { %v684_v14 = vsel %vm680_vm4, %v664_v4, %v667_v8  ;;  %v685_v15 = vsel %vm683_vm7, %v673_v10, 2102212464  ;;  %v688_v16 = vsel %vm680_vm4, %v667_v8, %v670_v9  ;;  %v692_v17 = vsel %vm680_vm4, %v670_v9, %v673_v10 }
 0x10c   :  { %v686_v18 = vsel %vm682_vm6, %v670_v9, %v685_v15  ;;  %v689_v19 = vsel %vm683_vm7, %v676_v12, 920167782  ;;  %v693_v20 = vsel %vm683_vm7, %v679_v13, 1326507024  ;;  %v564_v25 = vshll.u32 %v890_v57, %v558_v56 }
 0x10d   :  { %v690_v22 = vsel %vm682_vm6, %v673_v10, %v689_v19  ;;  %v694_v23 = vsel %vm682_vm6, %v676_v12, %v693_v20  ;;  %v687_v26 = vsel %vm681_vm5, %v684_v14, %v686_v18  ;;  %v565_v29 = vshrl.u32 %v891_v59, %v559_v11 }
 0x10e   :  { %v691_v27 = vsel %vm681_vm5, %v688_v16, %v690_v22  ;;  %v695_v28 = vsel %vm681_vm5, %v692_v17, %v694_v23  ;;  %v563_v37 = vor.u32 %v562_v24, %v561_v21  ;;  %v567_v40 = vshll.u32 %v891_v59, %v558_v56 }
 0x10f   :  { %v969_v30 = vmul.u32.u64.low %v957_v50, %v695_v28  ;;  %v970_v34 = vmul.u32.u64.high %v957_v50, %v695_v28, %v969_v30  ;;  %v973_v35 = vmul.u32.u64.low %v957_v50, %v691_v27  ;;  %v974_v36 = vmul.u32.u64.high %v957_v50, %v691_v27, %v973_v35 }
 0x110   :  { %v566_v39 = vor.u32 %v565_v29, %v564_v25  ;;  %v568_v41 = vshrl.u32 %v892_v61, %v559_v11  ;;  %v570_v42 = vshll.u32 %v892_v61, %v558_v56  ;;  %v571_v43 = vshrl.u32 %v893_v63, %v559_v11 }
 0x111   :  { %v574_v44 = vshrl.u32 %v894_v6, %v559_v11  ;;  %v703_v46 = vmul.u32 %v957_v50, %v687_v26  ;;  %v560_v47 = vshrl.u32 %v889_v53, %v559_v11  ;;  %v573_v49 = vshll.u32 %v893_v63, %v558_v56 }
 0x112   :  { %v569_v48 = vor.u32 %v568_v41, %v567_v40  ;;  %vm705_vm8 = vc.u32 %v970_v34, %v973_v35  ;;  %v706_v52 = vadd.s32 1, %v974_v36  ;;  %v572_v54 = vor.u32 %v571_v43, %v570_v42 }
 0x113   :  { %vm576_vm9 = vcmp.lt.s32.totalorder %v960_v55, 1  ;;  %v575_v57 = vor.u32 %v574_v44, %v573_v49  ;;  %vm578_vm10 = vcmp.lt.s32.totalorder %v960_v55, 3  ;;  %vm579_vm11 = vcmp.lt.s32.totalorder %v960_v55, 4 }
 0x114   :  { %v584_v58 = vsel %vm576_vm9, %v563_v37, %v566_v39  ;;  %v707_v51 = vsel %vm705_vm8, %v706_v52, %v974_v36  ;;  %v581_v59 = vsel %vm579_vm11, %v569_v48, 2102212464  ;;  %v585_v50 = vsel %vm579_vm11, %v572_v54, 920167782 }
 0x115   :  { %v588_v53 = vsel %vm576_vm9, %v566_v39, %v569_v48  ;;  %v708_v60 = vadd.s32 %v707_v51, %v703_v46  ;;  %vm577_vm12 = vcmp.lt.s32.totalorder %v960_v55, 2  ;;  %v586_v56 = vsel %vm578_vm10, %v569_v48, %v585_v50 }
 0x116   :  { %v589_v61 = vsel %vm579_vm11, %v575_v57, 1326507024  ;;  %v580_v62 = vsel %vm576_vm9, %v560_v47, %v563_v37  ;;  %v582_v63 = vsel %vm578_vm10, %v566_v39, %v581_v59  ;;  %v587_v0 = vsel %vm577_vm12, %v584_v58, %v586_v56 }
 0x117   :  { %v590_v1 = vsel %vm578_vm10, %v572_v54, %v589_v61  ;;  %v709_v2 = vadd.s32 536870912, %v708_v60  ;;  %v984_v4 = vmul.u32.u64.low %v592_v45, %v587_v0  ;;  %v985_v5 = vmul.u32.u64.high %v592_v45, %v587_v0, %v984_v4 }
 0x118   :  { %v591_v3 = vsel %vm577_vm12, %v588_v53, %v590_v1  ;;  %v583_v9 = vsel %vm577_vm12, %v580_v62, %v582_v63  ;;  %v704_v25 = vadd.s32 %v973_v35, %v970_v34  ;;  %vm740_vm7 = vweird.f32 %v943_v31 }
 0x119   :  { %v987_v6 = vmul.u32.u64.low %v592_v45, %v591_v3  ;;  %v988_v7 = vmul.u32.u64.high %v592_v45, %v591_v3, %v987_v6  ;;  %v710_v8 = vshrl.u32 %v709_v2, 30  ;;  %v602_v11 = vadd.s32 1, %v985_v5 }
 0x11a   :  { %v599_v55 = vmul.u32 %v592_v45, %v583_v9  ;;  %vm636_vm11 = vweird.f32 %v945_v32 }
 0x11b   :  { %v711_v10 = vshll.u32 %v710_v8, 30  ;;  %vm601_vm13 = vc.u32 %v988_v7, %v984_v4  ;;  %v600_v46 = vadd.s32 %v984_v4, %v988_v7  ;;  %v734_v35 = vsub.s32 4, %v710_v8 }
 0x11c   :  { %v603_v13 = vsel %vm601_vm13, %v602_v11, %v985_v5 }
 0x11d   :  { %v712_v12 = vsub.s32 %v708_v60, %v711_v10  ;;  %v604_v14 = vadd.s32 %v603_v13, %v599_v55  ;;  %v735_v50 = vsel %vm650_vm0, %v734_v35, %v710_v8 }
 0x11e   :  { %v737_v62 = vsel %vm649_vm1, 0, %v735_v50 }
 0x11f   :  { %v714_v15 = vsub.s32 0, %v712_v12  ;;  %v605_v16 = vadd.s32 536870912, %v604_v14  ;;  %v741_v1 = vadd.s32 3, %v737_v62 }
 0x121   :  { %v779_v17 = vmin.u32 %v714_v15, %v712_v12  ;;  %v606_v18 = vshrl.u32 %v605_v16, 30  ;;  %v742_v5 = vand.u32 3, %v741_v1 }
 0x123   :  { %v716_v19 = vclz %v779_v17  ;;  %v607_v20 = vshll.u32 %v606_v18, 30  ;;  %v630_v0 = vsub.s32 4, %v606_v18  ;;  %vm747_vm4 = vcmp.eq.s32.totalorder %v742_v5, 2 }
 0x124   :  { %vm744_vm5 = vcmp.eq.s32.totalorder %v742_v5, 0  ;;  %vm743_vm6 = vcmp.lt.s32.totalorder %v742_v5, 2 }
 0x125   :  { %v780_v21 = vadd.s32 4294967294, %v716_v19  ;;  %v608_v22 = vsub.s32 %v604_v14, %v607_v20  ;;  %v631_v3 = vsel %vm546_vm2, %v630_v0, %v606_v18 }
 0x126   :  { %v633_v7 = vsel %vm545_vm3, 0, %v631_v3 }
 0x127   :  { %vm781_vm14 = vcmp.lt.s32.totalorder %v780_v21, 0  ;;  %v610_v24 = vsub.s32 0, %v608_v22  ;;  %v637_v11 = vadd.s32 3, %v633_v7 }
 0x128   :  { %v719_v23 = vsel %vm781_vm14, 0, %v780_v21 }
 0x129   :  { %v720_v26 = vsub.s32 32, %v719_v23  ;;  %v724_v27 = vsub.s32 4294967266, %v719_v23  ;;  %v775_v28 = vmin.u32 %v610_v24, %v608_v22  ;;  %v721_v29 = vshll.u32 %v712_v12, %v719_v23 }
 0x12a   :  { %v638_v15 = vand.u32 3, %v637_v11 }
 0x12b   :  { %v722_v30 = vshrl.u32 %v704_v25, %v720_v26  ;;  %v725_v36 = vadd.s32 127, %v724_v27  ;;  %v612_v37 = vclz %v775_v28 }
 0x12c   :  { %vm643_vm8 = vcmp.eq.s32.totalorder %v638_v15, 2  ;;  %vm640_vm9 = vcmp.eq.s32.totalorder %v638_v15, 0  ;;  %vm639_vm10 = vcmp.lt.s32.totalorder %v638_v15, 2 }
 0x12d   :  { %v723_v39 = vor.u32 %v722_v30, %v721_v29  ;;  %v726_v40 = vshll.u32 %v725_v36, 23  ;;  %v776_v41 = vadd.s32 4294967294, %v612_v37 }
 0x12f   :  { %v727_v42 = vor.u32 4788187, %v726_v40  ;;  %vm777_vm15 = vcmp.lt.s32.totalorder %v776_v41, 0  ;;  %v730_v44 = vcvt.s32.f32 %v723_v39 }
 0x130   :  { %v615_v45 = vsel %vm777_vm15, 0, %v776_v41 }
 0x131   :  { %v728_v43 = vand.u32 2147483647, %v727_v42  ;;  %v616_v47 = vsub.s32 32, %v615_v45  ;;  %v620_v48 = vsub.s32 4294967266, %v615_v45  ;;  %v617_v49 = vshll.u32 %v608_v22, %v615_v45  ;;  %v21_v22 = vld [vmem:[%s1023_s0] sm:$0xff] }
 0x133   :  { %v731_v34 = vmul.f32 %v730_v44, %v728_v43  ;;  %v618_v52 = vshrl.u32 %v600_v46, %v616_v47  ;;  %v621_v54 = vadd.s32 127, %v620_v48 }
 0x135   :  { %v732_v57 = vxor.u32 2147483648, %v731_v34  ;;  %v619_v58 = vor.u32 %v618_v52, %v617_v49  ;;  %v622_v51 = vshll.u32 %v621_v54, 23 }
 0x137   :  { %v733_v59 = vsel %vm650_vm0, %v732_v57, %v731_v34  ;;  %v623_v60 = vor.u32 4788187, %v622_v51  ;;  %v626_v61 = vcvt.s32.f32 %v619_v58 }
 0x138   :  { %v736_v53 = vsel %vm649_vm1, %v943_v31, %v733_v59 }
 0x139   :  { %857 = vcosq.f32 %v736_v53  ;;  %v624_v56 = vand.u32 2147483647, %v623_v60 }
 0x13a   :  { %859 = vsinq.f32 %v736_v53 }
 0x13b   :  { %v627_v63 = vmul.f32 %v626_v61, %v624_v56 }
 0x13d   :  { %v628_v2 = vxor.u32 2147483648, %v627_v63 }
 0x13f   :  { %v629_v33 = vsel %vm546_vm2, %v628_v2, %v627_v63 }
 0x140   :  { %v632_v4 = vsel %vm545_vm3, %v945_v32, %v629_v33 }
 0x141   :  { %861 = vcosq.f32 %v632_v4 }
 0x142   :  { %863 = vsinq.f32 %v632_v4 }
 0x143   :  { %v858_v6 = vpop.eup %857 }
 0x144   :  { %v860_v8 = vpop.eup %859  ;;  %v748_v9 = vxor.u32 2147483648, %v858_v6 }
 0x145   :  { %v745_v10 = vxor.u32 2147483648, %v860_v8 }
 0x146   :  { %v749_v55 = vsel %vm747_vm4, %v748_v9, %v860_v8 }
 0x147   :  { %v746_v12 = vsel %vm744_vm5, %v858_v6, %v745_v10 }
 0x148   :  { %v750_v13 = vsel %vm743_vm6, %v746_v12, %v749_v55 }
 0x149   :  { %v751_v14 = vsel %vm740_vm7, nan, %v750_v13 }
 0x14a   :  { %v753_v16 = vadd.f32 %v751_v14, %v22_v38 }
 0x14b   :  { %v862_v17 = vpop.eup %861 }
 0x14c   :  { %755 = vst [vmem:[#allocation2 + $0x8] sm:$0xff] %v753_v16  ;;  %v864_v18 = vpop.eup %863  ;;  %v644_v19 = vxor.u32 2147483648, %v862_v17 }
 0x14d   :  { %v641_v20 = vxor.u32 2147483648, %v864_v18 }
 0x14e   :  { %v645_v21 = vsel %vm643_vm8, %v644_v19, %v864_v18 }
 0x14f   :  { %v642_v23 = vsel %vm640_vm9, %v862_v17, %v641_v20 }
 0x150   :  { %v646_v31 = vsel %vm639_vm10, %v642_v23, %v645_v21 }
 0x151   :  { %v647_v24 = vsel %vm636_vm11, nan, %v646_v31 }
 0x152   :  { %v752_v25 = vadd.f32 %v647_v24, %v21_v22 }
 0x154   :  { %754 = vst [vmem:[#allocation2] sm:$0xff] %v752_v25 }
 0x155   :  { %876 = shalt.err (!%p873_p4)
}
 0x156   :  { %s877_s7 = scalar_lea.hbm %s1028_s5, 256 }
 0x157   :  { %p878_p5 = scmp.ne.s32.totalorder %s1028_s5, %s877_s7  ;;  %p881_p6 = scmp.lt.u32.totalorder %s877_s7, %s1028_s5 }
 0x159   :  { %p883_p7 = pnand %p881_p6, %p878_p5 }
 0x15b   :  { %886 = shalt.err (!%p883_p7)
}
 0x15c   :  { %s896_s12 = smov 128   ;;  %s897_s13 = smov 8  }
 0x15d   :  { %767 = dma.vmem_to_hbm [thread:$0]  %s762_s29, 256, %s1028_s5, [#allocation3], %s896_s12, %s896_s12, %s897_s13  }
 0x15e   :  { %887 = dma.done.wait [#allocation3], 256  }
 0x15f   :  { %888 = vsyncadd [#allocation3], 4294967040 }
 0x160   :  { %771 = vsyncpa [#allocation3], 1 }

</bundles_post_ra>
